<compile_context>
chip_gen: v6e
topology: v6e:2x2x1
jax: 0.10.0
libtpu: 0.0.40
codegen_flags: <defaults>
</compile_context>

<pallas_src>
import jax
import jax.numpy as jnp
from jax.experimental import pallas as pl
from jax.experimental.pallas import tpu as pltpu


def _dualnet_kernel(x_ref, wf_t_ref, bf_ref, wh_ref, bh_ref, out_ref, acc_ref):
    """One (sample, spatial-tile) grid step.

    x_ref    : (1, C, TILE_HW) f32   spatial dim lane-dense
    wf_t_ref : (2D, C)         f32   fused [wf1 | wf2]^T        (VMEM resident)
    bf_ref   : (2D, 1)         f32   fused feature bias column  (VMEM resident)
    wh_ref   : (2D, K)         f32   fused head weight [wh1 ; wh2] * (0.5 / HW)
    bh_ref   : (1, K)          f32   0.5 * (bh1 + bh2) row
    out_ref  : (1, 1, K)       f32   per-sample output block (lane-dense)
    acc_ref  : (2D, 1)         f32   scratch: running spatial sum of relu(feat)
    """
    j = pl.program_id(1)

    # Fused feature matmul for BOTH branches over this spatial tile:
    # (2D, C) @ (C, TILE_HW) -> (2D, TILE_HW), f32 accumulation.
    # NOTE: contraction depth is C (=4), so the MXU is contraction-starved on
    # every generation; an unrolled VPU broadcast-MAC is the A/B alternative,
    # but jnp.dot is kept since the kernel is HBM-bound on x at these shapes.
    h = jnp.dot(wf_t_ref[...], x_ref[0], preferred_element_type=jnp.float32)
    # Bias + ReLU in f32 on the VPU (v5e-safe: no bf16 elementwise path).
    h = jnp.maximum(h + bf_ref[...], 0.0)

    # Per-tile lane reduction (XLU slot, free next to the VPU work) -> column.
    col = jnp.sum(h, axis=1, keepdims=True)                      # (2D, 1)

    @pl.when(j == 0)
    def _init():
        acc_ref[...] = col

    @pl.when(j != 0)
    def _accumulate():
        acc_ref[...] += col

    # Finalize on this sample's last spatial tile.  The head matmul is done as
    # a lane-broadcast multiply + sublane reduce so the logits come out as a
    # lane-dense (1, K) row directly (no transpose, no masked stores).  The
    # 1/HW pooling factor and the 0.5 branch-average are pre-folded into wh/bh.
    @pl.when(j == pl.num_programs(1) - 1)
    def _finalize():
        pooled = acc_ref[...]                                    # (2D, 1)
        logits = jnp.sum(wh_ref[...] * pooled, axis=0, keepdims=True)  # (1, K)
        out_ref[0] = (logits + bh_ref[...]).astype(out_ref.dtype)


def _pick_tile_hw(hw, c, itemsize=4):
    """Spatial tile choice.

    If one sample's whole (C, HW) slab is small (<= 2 MiB), use a single
    full-extent block per sample: zero per-tile overhead, and the BlockSpec
    pipeline overlaps across the sample axis instead.  Otherwise pick the
    largest 128-multiple tile (<= 8192) dividing HW; the (2D, 1) accumulator
    means scratch no longer scales with the tile, so big tiles are cheap.
    """
    if c * hw * itemsize <= 2 * 1024 * 1024:
        return hw
    for t in (8192, 4096, 2048, 1024, 512, 256, 128):
        if hw % t == 0:
            return t
    return hw   # fall back to one full-extent spatial block


def dualnet_forward(x_nchw, params):
    """x_nchw: (N, C, H, W) float32.  params: weights for both nets."""
    N, C, H, W = x_nchw.shape
    HW = H * W
    D = params["wf1"].shape[1]
    K = params["wh1"].shape[1]
    D2 = 2 * D

    # NCHW -> (N, C, HW) is a pure reshape (no transpose, no extra HBM pass);
    # x stays f32 so the kernel reads it straight from HBM with no cast pass.
    x = x_nchw.reshape(N, C, HW)

    # Fuse the two branches once, outside the kernel (tiny tensors).
    wf_t = jnp.concatenate([params["wf1"], params["wf2"]], axis=1).T          # (2D, C)
    bf_col = jnp.concatenate([params["bf1"], params["bf2"]],
                             axis=1).reshape(D2, 1)                           # (2D, 1)
    # Pre-fold the 1/HW pooling factor and the 0.5 branch average.
    wh = jnp.concatenate([params["wh1"], params["wh2"]], axis=0) * (0.5 / HW)  # (2D, K)
    bh_row = (0.5 * (params["bh1"] + params["bh2"])).reshape(1, K)             # (1, K)

    tile_hw = _pick_tile_hw(HW, C)
    grid = (N, HW // tile_hw)

    flops = (2 * N * HW * C * D2      # fused feature matmul
             + 3 * N * HW * D2        # bias + relu + per-tile lane reduce
             + 2 * N * D2 * K)        # fused head multiply-reduce
    bytes_accessed = (x.size * 4 + wf_t.size * 4 + bf_col.size * 4
                      + wh.size * 4 + bh_row.size * 4 + N * K * 4)

    out = pl.pallas_call(
        _dualnet_kernel,
        out_shape=jax.ShapeDtypeStruct((N, 1, K), jnp.float32),
        grid_spec=pltpu.PrefetchScalarGridSpec(
            num_scalar_prefetch=0,
            grid=grid,
            in_specs=[
                # x: one sample, one spatial tile per grid step (pipelined).
                pl.BlockSpec((1, C, tile_hw), lambda i, j: (i, 0, j)),
                # Small fused weights: full-array, constant index -> DMA'd once.
                pl.BlockSpec((D2, C), lambda i, j: (0, 0)),
                pl.BlockSpec((D2, 1), lambda i, j: (0, 0)),
                pl.BlockSpec((D2, K), lambda i, j: (0, 0)),
                pl.BlockSpec((1, K), lambda i, j: (0, 0)),
            ],
            out_specs=pl.BlockSpec((1, 1, K), lambda i, j: (i, 0, 0)),
            scratch_shapes=[pltpu.VMEM((D2, 1), jnp.float32)],
        ),
        compiler_params=pltpu.CompilerParams(
            dimension_semantics=("parallel", "arbitrary"),
            vmem_limit_bytes=32 * 1024 * 1024,
        ),
        cost_estimate=pl.CostEstimate(flops=flops, transcendentals=0,
                                      bytes_accessed=bytes_accessed),
    )(x, wf_t, bf_col, wh, bh_row)

    return out.reshape(N, K)


def make_params(key, in_ch, feat_dim, num_class):
    """Deterministic parameter init for both nets (synthetic backbone + head)."""
    import math
    ks = jax.random.split(key, 4)

    def backbone(k):
        kw, kb = jax.random.split(k)
        wf = jax.random.normal(kw, (in_ch, feat_dim), jnp.float32) / math.sqrt(in_ch)
        bf = jax.random.normal(kb, (1, feat_dim), jnp.float32) * 0.01
        return wf, bf

    def head(k):
        # init_weights: xavier_uniform_ on weight, bias filled with 0.01.
        limit = math.sqrt(6.0 / (feat_dim + num_class))
        wh = jax.random.uniform(k, (feat_dim, num_class), jnp.float32,
                                minval=-limit, maxval=limit)
        bh = jnp.full((1, num_class), 0.01, jnp.float32)
        return wh, bh

    wf1, bf1 = backbone(ks[0])
    wh1, bh1 = head(ks[1])
    wf2, bf2 = backbone(ks[2])
    wh2, bh2 = head(ks[3])
    return dict(wf1=wf1, bf1=bf1, wh1=wh1, bh1=bh1,
                wf2=wf2, bf2=bf2, wh2=wh2, bh2=bh2)


def _reference_forward(x_nchw, params):
    """Plain-JAX f32 reference of the same math, for a correctness check."""
    N, C, H, W = x_nchw.shape
    x2d = jnp.transpose(x_nchw, (0, 2, 3, 1)).reshape(N * H * W, C)

    def branch(wf, bf, wh, bh):
        h = jnp.maximum(x2d @ wf + bf, 0.0).reshape(N, H * W, -1)
        return jnp.mean(h, axis=1) @ wh + bh

    o1 = branch(params["wf1"], params["bf1"], params["wh1"], params["bh1"])
    o2 = branch(params["wf2"], params["bf2"], params["wh2"], params["bh2"])
    return (o1 + o2) / 2.0


if __name__ == "__main__":
    N, C, H, W = 2, 4, 16, 16
    FEAT_IN = 32        # backbone feature dim == head.fc in_features (per branch)
    NUM_CLASS = 8

    key = jax.random.PRNGKey(0)
    kx, kp = jax.random.split(key)
    x = jax.random.normal(kx, (N, C, H, W), jnp.float32)
    params = make_params(kp, C, FEAT_IN, NUM_CLASS)

    out = jax.block_until_ready(dualnet_forward(x, params))

    ref = _reference_forward(x, params)
    assert out.shape == (N, NUM_CLASS)
    # Full f32 pipeline now -> tight tolerance.
    assert jnp.allclose(out, ref, atol=1e-3, rtol=1e-3)

    # TODO(synk): the real timm backbone (create_model) is opaque; a synthetic
    # 1x1-conv + GAP backbone of matching structure is used in its place.
    print("KERNEL_OK")
</pallas_src>

<mosaic_0001>
module attributes {stable_mosaic.version = 11 : i64} {
  func.func @_dualnet_kernel(%arg0: i32, %arg1: i32, %arg2: memref<1x4x256xf32, #tpu.memory_space<vmem>>, %arg3: memref<64x4xf32, #tpu.memory_space<vmem>>, %arg4: memref<64x1xf32, #tpu.memory_space<vmem>>, %arg5: memref<64x8xf32, #tpu.memory_space<vmem>>, %arg6: memref<1x8xf32, #tpu.memory_space<vmem>>, %arg7: memref<1x1x8xf32, #tpu.memory_space<vmem>>, %arg8: memref<64x1xf32, #tpu.memory_space<vmem>>) attributes {dimension_semantics = [#tpu.dimension_semantics<parallel>, #tpu.dimension_semantics<arbitrary>], iteration_bounds = array<i64: 2, 1>, scalar_prefetch = 0 : i64, scratch_operands = 1 : i64, tpu.core_type = #tpu.core_type<tc>, window_params = [{transform_indices = @transform_0, window_bounds = array<i64: 1, 4, 256>}, {pipeline_mode = #tpu.pipeline_mode<synchronous>, transform_indices = @transform_1, window_bounds = array<i64: 64, 4>}, {pipeline_mode = #tpu.pipeline_mode<synchronous>, transform_indices = @transform_2, window_bounds = array<i64: 64, 1>}, {pipeline_mode = #tpu.pipeline_mode<synchronous>, transform_indices = @transform_3, window_bounds = array<i64: 64, 8>}, {pipeline_mode = #tpu.pipeline_mode<synchronous>, transform_indices = @transform_4, window_bounds = array<i64: 1, 8>}, {transform_indices = @transform_5, window_bounds = array<i64: 1, 1, 8>}]} {
    %c0 = arith.constant 0 : index
    %c0_0 = arith.constant 0 : index
    %0 = vector.load %arg3[%c0, %c0_0] : memref<64x4xf32, #tpu.memory_space<vmem>>, vector<64x4xf32>
    %c0_1 = arith.constant 0 : index
    %c0_2 = arith.constant 0 : index
    %c0_3 = arith.constant 0 : index
    %1 = vector.load %arg2[%c0_1, %c0_2, %c0_3] : memref<1x4x256xf32, #tpu.memory_space<vmem>>, vector<1x4x256xf32>
    %2 = vector.shape_cast %1 : vector<1x4x256xf32> to vector<4x256xf32>
    %cst = arith.constant dense<0.000000e+00> : vector<64x256xf32>
    %3 = tpu.matmul %0, %2, %cst {dimension_numbers = #tpu.dot_dimension_numbers<[1], [0], [0], [1], [0, 0, 1, 1], [], []>} : vector<64x4xf32>, vector<4x256xf32>, vector<64x256xf32> -> vector<64x256xf32>
    %c0_4 = arith.constant 0 : index
    %c0_5 = arith.constant 0 : index
    %4 = vector.load %arg4[%c0_4, %c0_5] : memref<64x1xf32, #tpu.memory_space<vmem>>, vector<64x1xf32>
    %5 = vector.broadcast %4 : vector<64x1xf32> to vector<64x256xf32>
    %6 = arith.addf %3, %5 : vector<64x256xf32>
    %cst_6 = arith.constant 0.000000e+00 : f32
    %7 = vector.broadcast %cst_6 : f32 to vector<64x256xf32>
    %8 = arith.maximumf %6, %7 : vector<64x256xf32>
    %cst_7 = arith.constant dense<0.000000e+00> : vector<64xf32>
    %9 = vector.multi_reduction <add>, %8, %cst_7 [1] : vector<64x256xf32> to vector<64xf32>
    %10 = vector.shape_cast %9 : vector<64xf32> to vector<64x1xf32>
    %c0_i32 = arith.constant 0 : i32
    %11 = arith.cmpi eq, %arg1, %c0_i32 : i32
    %12 = arith.extui %11 : i1 to i32
    %c0_i32_8 = arith.constant 0 : i32
    %13 = arith.cmpi ne, %12, %c0_i32_8 : i32
    scf.if %13 {
      %c0_13 = arith.constant 0 : index
      %c0_14 = arith.constant 0 : index
      %20 = vector.load %arg8[%c0_13, %c0_14] : memref<64x1xf32, #tpu.memory_space<vmem>>, vector<64x1xf32>
      tpu.vector_store %arg8[%c0_13, %c0_14], %10 {strides = array<i32>} : memref<64x1xf32, #tpu.memory_space<vmem>>, vector<64x1xf32>,
    } else {
    }
    %c0_i32_9 = arith.constant 0 : i32
    %14 = arith.cmpi ne, %arg1, %c0_i32_9 : i32
    %15 = arith.extui %14 : i1 to i32
    %c0_i32_10 = arith.constant 0 : i32
    %16 = arith.cmpi ne, %15, %c0_i32_10 : i32
    scf.if %16 {
      %c0_13 = arith.constant 0 : index
      %c0_14 = arith.constant 0 : index
      %20 = vector.load %arg8[%c0_13, %c0_14] : memref<64x1xf32, #tpu.memory_space<vmem>>, vector<64x1xf32>
      %21 = arith.addf %20, %10 : vector<64x1xf32>
      %c0_15 = arith.constant 0 : index
      %c0_16 = arith.constant 0 : index
      %22 = vector.load %arg8[%c0_15, %c0_16] : memref<64x1xf32, #tpu.memory_space<vmem>>, vector<64x1xf32>
      tpu.vector_store %arg8[%c0_15, %c0_16], %21 {strides = array<i32>} : memref<64x1xf32, #tpu.memory_space<vmem>>, vector<64x1xf32>,
    } else {
    }
    %c0_i32_11 = arith.constant 0 : i32
    %17 = arith.cmpi eq, %arg1, %c0_i32_11 : i32
    %18 = arith.extui %17 : i1 to i32
    %c0_i32_12 = arith.constant 0 : i32
    %19 = arith.cmpi ne, %18, %c0_i32_12 : i32
    scf.if %19 {
      %c0_13 = arith.constant 0 : index
      %c0_14 = arith.constant 0 : index
      %20 = vector.load %arg8[%c0_13, %c0_14] : memref<64x1xf32, #tpu.memory_space<vmem>>, vector<64x1xf32>
      %c0_15 = arith.constant 0 : index
      %c0_16 = arith.constant 0 : index
      %21 = vector.load %arg5[%c0_15, %c0_16] : memref<64x8xf32, #tpu.memory_space<vmem>>, vector<64x8xf32>
      %22 = vector.broadcast %20 : vector<64x1xf32> to vector<64x8xf32>
      %23 = arith.mulf %21, %22 : vector<64x8xf32>
      %cst_17 = arith.constant dense<0.000000e+00> : vector<8xf32>
      %24 = vector.multi_reduction <add>, %23, %cst_17 [0] : vector<64x8xf32> to vector<8xf32>
      %25 = vector.shape_cast %24 : vector<8xf32> to vector<1x8xf32>
      %c0_18 = arith.constant 0 : index
      %c0_19 = arith.constant 0 : index
      %26 = vector.load %arg6[%c0_18, %c0_19] : memref<1x8xf32, #tpu.memory_space<vmem>>, vector<1x8xf32>
      %27 = arith.addf %25, %26 : vector<1x8xf32>
      %c0_20 = arith.constant 0 : index
      %c0_21 = arith.constant 0 : index
      %c0_22 = arith.constant 0 : index
      %28 = vector.load %arg7[%c0_20, %c0_21, %c0_22] : memref<1x1x8xf32, #tpu.memory_space<vmem>>, vector<1x1x8xf32>
      %29 = vector.shape_cast %28 : vector<1x1x8xf32> to vector<1x8xf32>
      %30 = vector.shape_cast %27 : vector<1x8xf32> to vector<1x1x8xf32>
      tpu.vector_store %arg7[%c0_20, %c0_21, %c0_22], %30 {strides = array<i32>} : memref<1x1x8xf32, #tpu.memory_space<vmem>>, vector<1x1x8xf32>,
    } else {
    }
    return
  }
  func.func @transform_0(%arg0: i32, %arg1: i32) -> (i32, i32, i32) {
    %c0_i32 = arith.constant 0 : i32
    %c0_i32_0 = arith.constant 0 : i32
    return %arg0, %c0_i32, %arg1 : i32, i32, i32
  }
  func.func @transform_1(%arg0: i32, %arg1: i32) -> (i32, i32) {
    %c0_i32 = arith.constant 0 : i32
    %c0_i32_0 = arith.constant 0 : i32
    %c0_i32_1 = arith.constant 0 : i32
    return %c0_i32, %c0_i32_0 : i32, i32
  }
  func.func @transform_2(%arg0: i32, %arg1: i32) -> (i32, i32) {
    %c0_i32 = arith.constant 0 : i32
    %c0_i32_0 = arith.constant 0 : i32
    %c0_i32_1 = arith.constant 0 : i32
    return %c0_i32, %c0_i32_0 : i32, i32
  }
  func.func @transform_3(%arg0: i32, %arg1: i32) -> (i32, i32) {
    %c0_i32 = arith.constant 0 : i32
    %c0_i32_0 = arith.constant 0 : i32
    %c0_i32_1 = arith.constant 0 : i32
    return %c0_i32, %c0_i32_0 : i32, i32
  }
  func.func @transform_4(%arg0: i32, %arg1: i32) -> (i32, i32) {
    %c0_i32 = arith.constant 0 : i32
    %c0_i32_0 = arith.constant 0 : i32
    %c0_i32_1 = arith.constant 0 : i32
    return %c0_i32, %c0_i32_0 : i32, i32
  }
  func.func @transform_5(%arg0: i32, %arg1: i32) -> (i32, i32, i32) {
    %c0_i32 = arith.constant 0 : i32
    %c0_i32_0 = arith.constant 0 : i32
    %c0_i32_1 = arith.constant 0 : i32
    return %arg0, %c0_i32, %c0_i32_0 : i32, i32, i32
  }
}

</mosaic_0001>

<bundles_post_ra>
// kernel: tpu_custom_call.1
= control target key start
LH: loop header
LB: loop body
LE: loop exit
PB: predicated region body
PF: predicated region fallthrough
CT: control target
= control target key end

     0   :  { %10 = vsyncpa [#allocation4], 0  ;;  %s1101_s0 = inlined_call_operand.vmem [shape: f32[2,4,256], index: 0, kind: input, shape index: {}]   ;;  %s1102_s1 = inlined_call_operand.vmem [shape: f32[64,4], index: 1, kind: input, shape index: {}]   ;;  %s1103_s2 = inlined_call_operand.vmem [shape: f32[64,1], index: 2, kind: input, shape index: {}]   ;;  %s1104_s3 = inlined_call_operand.vmem [shape: f32[64,8], index: 3, kind: input, shape index: {}]   ;;  %s1105_s4 = inlined_call_operand.vmem [shape: f32[1,8], index: 4, kind: input, shape index: {}]   ;;  %s1106_s5 = inlined_call_operand.hbm [shape: f32[2,1,8], index: 5, kind: output, shape index: {}]  }
   0x1   :  { %12 = vsyncpa [#allocation4 + $0x1], 0  ;;  %s903_s18 = smov 0   ;;  %s905_s19 = smov 0  }
   0x2   :  { %s907_s20 = smov 0   ;;  %s909_s21 = smov 0  }
   0x3   :  { %s911_s22 = smov 0   ;;  %s913_s23 = smov 0  }
   0x4 LB: > { %s709_s24 = sadd.s32 4294967295, %s868_s23   ;;  %s710_s25 = sadd.s32 4294967294, %s868_s23   ;;  %s868_s23 = sphi %s913_s23, %s18_s23   ;;  %s864_s22 = sphi %s911_s22, %s1113_s22   ;;  %s860_s21 = sphi %s909_s21, %s1112_s21   ;;  %s856_s20 = sphi %s907_s20, %s1111_s20   ;;  %s852_s19 = sphi %s905_s19, %s1110_s19   ;;  %s848_s18 = sphi %s903_s18, %s1109_s18  }
   0x5   : > { %s30_s26 = sadd.s32 1, %s864_s22  ;;  %s149_s27 = sadd.s32 1, %s856_s20 }
   0x6   : > { %p32_p0 = scmp.ge.s32.totalorder %s30_s26, 2  ;;  %p159_p1 = scmp.ne.s32.totalorder %s856_s20, %s852_s19 }
   0x7   : > { %p160_p2 = scmp.eq.s32.totalorder %s709_s24, 1  ;;  %p165_p3 = scmp.ne.s32.totalorder %s852_s19, %s848_s18 }
   0x8   : > { %s1115_s26 = smov (%p32_p0, %s30_s26), 0  ;;  %p166_p5 = scmp.eq.s32.totalorder %s710_s25, 1 }
   0x9   : > { %p943_p4 = por %p160_p2, %p159_p1  ;;  %s146_s29 = ssub.s32 %s864_s22, %s1115_s26 }
   0xa   : > { %p713_p6 = scmp.ge.s32.totalorder %s868_s23, 1  ;;  %p147_p7 = scmp.eq.s32.totalorder %s146_s29, 0 }
   0xb   : > { %p950_p8 = por %p166_p5, %p165_p3  ;;  %p209_p9 = scmp.lt.s32.totalorder %s868_s23, 3 }
   0xc   : > { %s956_s6 = scalar_select %p147_p7, %s856_s20, %s149_s27  }
   0xd   : > { %p210_p10 = pnand %p713_p6, %p209_p9 }
   0xe   : > { %p241_p11 = scmp.lt.s32.totalorder (!%p210_p10), %s860_s21, 1  ;;  %s726_s24 = sshll.u32 (!%p210_p10), %s860_s21, 4 }
   0xf   : > { %213 = sbr.rel (%p210_p10) target bundleno = 553 (0x229), region = 40  ;;  %s638_s8 = scalar_lea.hbm (!%p210_p10), %s1106_s5, %s726_s24 }
  0x10   : > { %s872_s11 = smov (!%p210_p10), [#allocation3]  }
  0x14   : > { %v870_v0 = vmov 0.0   ;;  %s242_s7 = scalar_select %p241_p11, %s860_s21, 1  ;;  %v871_v1 = vmov 0   ;;  %v259_v2 = vld [vmem:[%s1103_s2] sm:$0xff]  ;;  %v261_v3 = vld [vmem:[%s1103_s2 + $0x10] sm:$0xff]  ;;  %v260_v4 = vld [vmem:[%s1103_s2 + $0x8] sm:$0xff] }
  0x15   : > { %403 = vmatprep.mubr.f32.mxu0 %v870_v0  ;;  %427 = vmatprep.mubr.f32.mxu1 %v870_v0  ;;  %v262_v5 = vld [vmem:[%s1103_s2 + $0x18] sm:$0xff]  ;;  %vm334_vm0 = vcmask 1043456   ;;  %v250_v8 = vld [vmem:[%s1102_s1] sm:$0xff]  ;;  %vm309_vm1 = vcmask 31744   ;;  %v264_v11 = vld [vmem:[%s1103_s2 + $0x28] sm:$0xff]  ;;  %vm496_vm2 = vcmask 7168  }
  0x16   : > { %789 = vset.pattern.permute.xlu0 %v871_v1  ;;  %790 = vset.pattern.permute.xlu1 %v871_v1  ;;  %s729_s12 = sshll.u32 %s242_s7, 3  ;;  %v254_v9 = vld [vmem:[%s1102_s1 + $0x20] sm:$0xff]  ;;  %v251_v12 = vld [vmem:[%s1102_s1 + $0x8] sm:$0xff]  ;;  %v265_v14 = vld [vmem:[%s1103_s2 + $0x30] sm:$0xff]  ;;  %vm601_vm3 = vcmask 64512   ;;  %vm625_vm4 = vcmask 57344  }
  0x17   : > { %269 = vperm.xlu0 %789, %v259_v2   ;;  %279 = vperm.xlu1 %790, %v261_v3   ;;  %s248_s15 = scalar_lea.vmem %s1101_s0, %s729_s12  ;;  %v263_v10 = vld [vmem:[%s1103_s2 + $0x20] sm:$0xff]  ;;  %v255_v13 = vld [vmem:[%s1102_s1 + $0x28] sm:$0xff]  ;;  %v266_v15 = vld [vmem:[%s1103_s2 + $0x38] sm:$0xff]  ;;  %s796_s12 = sshll.u32 %s872_s11, 4  ;;  %s797_s12 = int_to_ptr.vmem [resolvable:$false] %s796_s12 }
  0x18   : > { %v258_v6 = vld [vmem:[%s248_s15] sm:$0xff]  ;;  %v252_v16 = vld [vmem:[%s1102_s1 + $0x10] sm:$0xff]  ;;  %v253_v18 = vld [vmem:[%s1102_s1 + $0x18] sm:$0xff]  ;;  %s238_s15 = sand.u32 1, %s852_s19   ;;  %s798_s21 = scalar_lea.vmem %s797_s12, 32 }
  0x19   : > { %v308_v7 = vcombine.high %v258_v6, %v258_v6  ;;  %v256_v17 = vld [vmem:[%s1102_s1 + $0x30] sm:$0xff]  ;;  %v257_v19 = vld [vmem:[%s1102_s1 + $0x38] sm:$0xff]  ;;  %s239_s25 = scalar_lea.vmem [#allocation3], %s238_s15  ;;  %s628_s9 = scalar_lea.sflag [#allocation4], %s238_s15 }
  0x1a   : > { %s640_s27 = sshll.u32 %s239_s25, 4  ;;  %s641_s27 = int_to_ptr.vmem [resolvable:$true] %s640_s27 }
  0x1b   : > { %274 = vperm.xlu0 %789, %v260_v4   ;;  %284 = vperm.xlu1 %790, %v262_v5   ;;  %s792_s10 = scalar_lea.vmem %s641_s27, 16  ;;  %p799_p1 = scmp.lt.s32.totalorder %s641_s27, %s797_s12 }
  0x1c   : > { %716 = vmatprep.subr.msk.mxu0 %vm334_vm0, %v308_v7  ;;  %730 = vmatprep.subr.msk.mxu1 %vm334_vm0, %v308_v7  ;;  %p793_p12 = scmp.ne.s32.totalorder %s641_s27, %s792_s10  ;;  %p800_p2 = scmp.lt.s32.totalorder %s798_s21, %s792_s10 }
  0x1d   : > { %717 = vmatpush1.msk.msra.mxu0 %vm334_vm0, %v258_v6  ;;  %731 = vmatpush1.msk.msra.mxu1 %vm334_vm0, %v258_v6 }
  0x1e   : > { %718 = vmatmul.mubr.msk.f32.vlgmr.msra.gmra.mxu0 %vm309_vm1, %v250_v8  ;;  %722 = vmatmul.mubr.msk.f32.vlgmr.msra.gmra.mxu1 %vm309_vm1, %v254_v9  ;;  %p794_p13 = pnand %p793_p12, %p943_p4  ;;  %p801_p3 = por %p800_p2, %p799_p1 }
  0x1f   : > { %409 = vmatprep.mubr.f32.mxu0 %v870_v0  ;;  %433 = vmatprep.mubr.f32.mxu1 %v870_v0 }
  0x20   : > { %289 = vperm.xlu0 %789, %v263_v10   ;;  %294 = vperm.xlu1 %790, %v264_v11   ;;  %p795_p0 = pneg %p794_p13 }
  0x22   : > { %719 = vmatmul.mubr.msk.f32.gmra.mxu0 %vm309_vm1, %v251_v12  ;;  %723 = vmatmul.mubr.msk.f32.gmra.mxu1 %vm309_vm1, %v255_v13  ;;  %p802_p5 = pnand %p801_p3, %p795_p0 }
  0x23   : > { %415 = vmatprep.mubr.f32.mxu0 %v870_v0  ;;  %439 = vmatprep.mubr.f32.mxu1 %v870_v0 }
  0x24   : > { %299 = vperm.xlu0 %789, %v265_v14   ;;  %304 = vperm.xlu1 %790, %v266_v15  }
  0x26   : > { %720 = vmatmul.mubr.msk.f32.gmra.mxu0 %vm309_vm1, %v252_v16  ;;  %724 = vmatmul.mubr.msk.f32.gmra.mxu1 %vm309_vm1, %v256_v17 }
  0x27   : > { %421 = vmatprep.mubr.f32.mxu0 %v870_v0  ;;  %445 = vmatprep.mubr.f32.mxu1 %v870_v0 }
  0x2a   : > { %721 = vmatmul.mubr.msk.f32.gmra.mxu0 %vm309_vm1, %v253_v18  ;;  %725 = vmatmul.mubr.msk.f32.gmra.mxu1 %vm309_vm1, %v257_v19 }
  0x92   : > { %v270_v20 = vpop.permute.xlu0 %269  ;;  %v280_v24 = vpop.permute.xlu1 %279 }
  0x96   : > { %v275_v21 = vpop.permute.xlu0 %274  ;;  %v285_v37 = vpop.permute.xlu1 %284 }
  0x9b   : > { %v290_v31 = vpop.permute.xlu0 %289  ;;  %v295_v56 = vpop.permute.xlu1 %294 }
  0x9f   : > { %v300_v49 = vpop.permute.xlu0 %299  ;;  %v305_v9 = vpop.permute.xlu1 %304 }
  0xde   : > { %v405_v22 = vpop.f32.mrf.mxu0  ;;  %v429_v23 = vpop.f32.mrf.mxu1 }
  0xdf   : > { %v406_v25 = vadd.f32 %v405_v22, %v270_v20  ;;  %v430_v39 = vadd.f32 %v429_v23, %v290_v31 }
  0xe0   : > { %v407_v26 = vpop.f32.mrf.mxu0  ;;  %v431_v27 = vpop.f32.mrf.mxu1 }
  0xe1   : > { %v408_v28 = vadd.f32 %v407_v26, %v270_v20  ;;  %v452_v33 = vmax.f32 %v406_v25, 0.0  ;;  %v432_v40 = vadd.f32 %v431_v27, %v290_v31  ;;  %v460_v51 = vmax.f32 %v430_v39, 0.0 }
  0xe2   : > { %v411_v29 = vpop.f32.mrf.mxu0  ;;  %v435_v30 = vpop.f32.mrf.mxu1 }
  0xe3   : > { %v453_v32 = vmax.f32 %v408_v28, 0.0  ;;  %v412_v34 = vadd.f32 %v411_v29, %v275_v21  ;;  %v461_v52 = vmax.f32 %v432_v40, 0.0  ;;  %v436_v63 = vadd.f32 %v435_v30, %v295_v56 }
  0xe4   : > { %v413_v35 = vpop.f32.mrf.mxu0  ;;  %v437_v36 = vpop.f32.mrf.mxu1 }
  0xe5   : > { %v414_v38 = vadd.f32 %v413_v35, %v275_v21  ;;  %v468_v43 = vadd.f32 %v453_v32, %v452_v33  ;;  %v454_v45 = vmax.f32 %v412_v34, 0.0  ;;  %v438_v1 = vadd.f32 %v437_v36, %v295_v56  ;;  %v546_v36 = vld [vmem:[%s1104_s3 + $0x8] sm:$0xff]  ;;  %v551_v56 = vld [vmem:[%s1104_s3 + $0x30] sm:$0xff] }
  0xe6   : > { %v417_v41 = vpop.f32.mrf.mxu0  ;;  %v441_v42 = vpop.f32.mrf.mxu1  ;;  %v480_v3 = vadd.f32 %v461_v52, %v460_v51  ;;  %v462_v11 = vmax.f32 %v436_v63, 0.0 }
  0xe7   : > { %v455_v44 = vmax.f32 %v414_v38, 0.0  ;;  %v418_v46 = vadd.f32 %v417_v41, %v280_v24  ;;  %469 = vadd.xlane.f32.xlu0 %v468_v43  ;;  %v442_v61 = vadd.f32 %v441_v42, %v300_v49  ;;  %v463_v12 = vmax.f32 %v438_v1, 0.0  ;;  %v547_v41 = vld [vmem:[%s1104_s3 + $0x10] sm:$0xff] }
  0xe8   : > { %v419_v47 = vpop.f32.mrf.mxu0  ;;  %v443_v48 = vpop.f32.mrf.mxu1 }
  0xe9   : > { %v420_v50 = vadd.f32 %v419_v47, %v280_v24  ;;  %v444_v53 = vadd.f32 %v443_v48, %v300_v49  ;;  %v471_v55 = vadd.f32 %v455_v44, %v454_v45  ;;  %v456_v60 = vmax.f32 %v418_v46, 0.0  ;;  %v549_v47 = vld [vmem:[%s1104_s3 + $0x20] sm:$0xff]  ;;  %v548_v48 = vld [vmem:[%s1104_s3 + $0x18] sm:$0xff] }
  0xea   : > { %v423_v54 = vpop.f32.mrf.mxu0  ;;  %v447_v59 = vpop.f32.mrf.mxu1  ;;  %v464_v8 = vmax.f32 %v442_v61, 0.0  ;;  %v483_v17 = vadd.f32 %v463_v12, %v462_v11 }
  0xeb   : > { %v457_v57 = vmax.f32 %v420_v50, 0.0  ;;  %v424_v58 = vadd.f32 %v423_v54, %v285_v37  ;;  %472 = vadd.xlane.f32.xlu1 %v471_v55  ;;  %v465_v2 = vmax.f32 %v444_v53, 0.0  ;;  %v448_v15 = vadd.f32 %v447_v59, %v305_v9 }
  0xec   : > { %v425_v62 = vpop.f32.mrf.mxu0  ;;  %v449_v7 = vpop.f32.mrf.mxu1 }
  0xed   : > { %v426_v0 = vadd.f32 %v425_v62, %v285_v37  ;;  %v474_v4 = vadd.f32 %v457_v57, %v456_v60  ;;  %v458_v5 = vmax.f32 %v424_v58, 0.0  ;;  %v450_v13 = vadd.f32 %v449_v7, %v305_v9  ;;  %v545_v37 = vld [vmem:[%s1104_s3] sm:$0xff]  ;;  %v550_v58 = vld [vmem:[%s1104_s3 + $0x28] sm:$0xff] }
  0xee   : > { %v486_v14 = vadd.f32 %v465_v2, %v464_v8  ;;  %v466_v18 = vmax.f32 %v448_v15, 0.0  ;;  %v552_v2 = vld [vmem:[%s1104_s3 + $0x38] sm:$0xff] }
  0xef   : > { %v459_v6 = vmax.f32 %v426_v0, 0.0  ;;  %481 = vadd.xlane.f32.xlu1 %v480_v3  ;;  %475 = vadd.xlane.f32.xlu0 %v474_v4  ;;  %v467_v16 = vmax.f32 %v450_v13, 0.0 }
  0xf1   : > { %v477_v10 = vadd.f32 %v459_v6, %v458_v5  ;;  %v489_v19 = vadd.f32 %v467_v16, %v466_v18  ;;  %v623_v16 = vld [vmem:[%s1105_s4] sm:$0x1] }
  0xf3   : > { %487 = vadd.xlane.f32.xlu1 %v486_v14  ;;  %478 = vadd.xlane.f32.xlu0 %v477_v10 }
  0xf7   : > { %484 = vadd.xlane.f32.xlu0 %v483_v17 }
  0xfb   : > { %490 = vadd.xlane.f32.xlu0 %v489_v19 }
 0x170   : > { %v470_v20 = vpop.xlane.xlu0 %469 }
 0x171   : > { %497 = vst.msk [vmem:[#allocation2] sm:$0xff] %vm496_vm2, %v470_v20 }
 0x174   : > { %v473_v21 = vpop.xlane.xlu1 %472 }
 0x175   : > { %498 = vst.msk [vmem:[#allocation2 + $0x8] sm:$0xff] %vm496_vm2, %v473_v21 }
 0x178   : > { %v482_v22 = vpop.xlane.xlu1 %481  ;;  %v476_v23 = vpop.xlane.xlu0 %475  ;;  %v537_v24 = vld [vmem:[#allocation2] sm:$0xff] }
 0x179   : > { %501 = vst.msk [vmem:[#allocation2 + $0x20] sm:$0xff] %vm496_vm2, %v482_v22  ;;  %499 = vst.msk [vmem:[#allocation2 + $0x10] sm:$0xff] %vm496_vm2, %v476_v23  ;;  %555 = vperm.xlu1 %790, %v537_v24  }
 0x17c   : > { %v488_v25 = vpop.xlane.xlu1 %487  ;;  %v479_v26 = vpop.xlane.xlu0 %478  ;;  %v538_v27 = vld [vmem:[#allocation2 + $0x8] sm:$0xff] }
 0x17d   : > { %503 = vst.msk [vmem:[#allocation2 + $0x30] sm:$0xff] %vm496_vm2, %v488_v25  ;;  %500 = vst.msk [vmem:[#allocation2 + $0x18] sm:$0xff] %vm496_vm2, %v479_v26  ;;  %560 = vperm.xlu0 %789, %v538_v27  }
 0x180   : > { %v485_v28 = vpop.xlane.xlu0 %484  ;;  %v541_v29 = vld [vmem:[#allocation2 + $0x20] sm:$0xff]  ;;  %v539_v30 = vld [vmem:[#allocation2 + $0x10] sm:$0xff] }
 0x181   : > { %502 = vst.msk [vmem:[#allocation2 + $0x28] sm:$0xff] %vm496_vm2, %v485_v28  ;;  %575 = vperm.xlu0 %789, %v541_v29   ;;  %565 = vperm.xlu1 %790, %v539_v30  }
 0x184   : > { %v491_v31 = vpop.xlane.xlu0 %490  ;;  %v543_v32 = vld [vmem:[#allocation2 + $0x30] sm:$0xff]  ;;  %v540_v33 = vld [vmem:[#allocation2 + $0x18] sm:$0xff] }
 0x185   : > { %504 = vst.msk [vmem:[#allocation2 + $0x38] sm:$0xff] %vm496_vm2, %v491_v31  ;;  %585 = vperm.xlu0 %789, %v543_v32   ;;  %570 = vperm.xlu1 %790, %v540_v33  }
 0x188   : > { %v542_v34 = vld [vmem:[#allocation2 + $0x28] sm:$0xff] }
 0x189   : > { %580 = vperm.xlu1 %790, %v542_v34  }
 0x18c   : > { %v544_v35 = vld [vmem:[#allocation2 + $0x38] sm:$0xff] }
 0x18d   : > { %590 = vperm.xlu1 %790, %v544_v35  }
 0x1f4   : > { %v556_v38 = vpop.permute.xlu1 %555 }
 0x1f5   : > { %v593_v42 = vmul.f32 %v556_v38, %v545_v37 }
 0x1f7   : > { %v602_v49 = vsel %vm601_vm3, %v593_v42, 0.0 }
 0x1f8   : > { %v561_v39 = vpop.permute.xlu0 %560 }
 0x1f9   : > { %v594_v40 = vmul.f32 %v561_v39, %v546_v36 }
 0x1fb   : > { %v603_v45 = vsel %vm601_vm3, %v594_v40, 0.0 }
 0x1fc   : > { %v566_v43 = vpop.permute.xlu1 %565  ;;  %v576_v44 = vpop.permute.xlu0 %575  ;;  %v604_v51 = vadd.f32 %v603_v45, %v602_v49 }
 0x1fd   : > { %v595_v46 = vmul.f32 %v566_v43, %v547_v41  ;;  %v597_v53 = vmul.f32 %v576_v44, %v549_v47 }
 0x1ff   : > { %v605_v50 = vsel %vm601_vm3, %v595_v46, 0.0  ;;  %v609_v62 = vsel %vm601_vm3, %v597_v53, 0.0 }
 0x200   : > { %v571_v52 = vpop.permute.xlu1 %570  ;;  %v606_v55 = vadd.f32 %v605_v50, %v604_v51  ;;  %v586_v57 = vpop.permute.xlu0 %585 }
 0x201   : > { %v596_v54 = vmul.f32 %v571_v52, %v548_v48  ;;  %v599_v63 = vmul.f32 %v586_v57, %v551_v56 }
 0x203   : > { %v607_v59 = vsel %vm601_vm3, %v596_v54, 0.0  ;;  %v613_v6 = vsel %vm601_vm3, %v599_v63, 0.0 }
 0x204   : > { %v608_v60 = vadd.f32 %v607_v59, %v606_v55  ;;  %v581_v61 = vpop.permute.xlu1 %580 }
 0x205   : > { %v598_v0 = vmul.f32 %v581_v61, %v550_v58 }
 0x206   : > { %v610_v1 = vadd.f32 %v609_v62, %v608_v60 }
 0x207   : > { %v611_v3 = vsel %vm601_vm3, %v598_v0, 0.0 }
 0x208   : > { %v612_v4 = vadd.f32 %v611_v3, %v610_v1  ;;  %v591_v5 = vpop.permute.xlu1 %590 }
 0x209   : > { %v600_v7 = vmul.f32 %v591_v5, %v552_v2 }
 0x20a   : > { %v614_v8 = vadd.f32 %v613_v6, %v612_v4 }
 0x20b   : > { %v615_v9 = vsel %vm601_vm3, %v600_v7, 0.0 }
 0x20c   : > { %v616_v10 = vadd.f32 %v615_v9, %v614_v8 }
 0x20e   : > { %v617_v11 = vrot.slane %v616_v10, 4 }
 0x210   : > { %v618_v12 = vadd.f32 %v617_v11, %v616_v10 }
 0x212   : > { %v619_v13 = vrot.slane %v618_v12, 2 }
 0x214   : > { %v620_v14 = vadd.f32 %v619_v13, %v618_v12 }
 0x216   : > { %v621_v15 = vrot.slane %v620_v14, 1 }
 0x218   : > { %v622_v17 = vadd.f32 %v621_v15, %v620_v14 }
 0x21a   : > { %v624_v18 = vadd.f32 %v623_v16, %v622_v17 }
 0x21c   : > { %626 = vst.msk [vmem:[%s239_s25] sm:$0x1] %vm625_vm4, %v624_v18 }
 0x21d   : > { %805 = shalt.err (!%p802_p5)
}
 0x21e   : > { %s806_s13 = scalar_lea.hbm %s638_s8, 16  ;;  %s810_s16 = scalar_lea.hbm %s1106_s5, 32 }
 0x21f   : > { %p807_p6 = scmp.ne.s32.totalorder %s638_s8, %s806_s13  ;;  %p811_p10 = scmp.lt.s32.totalorder %s638_s8, %s1106_s5 }
 0x220   : > { %p812_p11 = scmp.lt.s32.totalorder %s810_s16, %s806_s13 }
 0x221   : > { %p808_p7 = pnand %p807_p6, %p943_p4 }
 0x222   : > { %p813_p12 = por %p812_p11, %p811_p10 }
 0x223   : > { %p809_p9 = pneg %p808_p7 }
 0x225   : > { %p814_p13 = pnand %p813_p12, %p809_p9 }
 0x227   : > { %817 = shalt.err (!%p814_p13)
}
 0x228   : > { %732 = dma.vmem_to_hbm [thread:$0]  (%p943_p4), %s641_s27, 16, %s638_s8, %s628_s9  }
 0x229 PF: > { %p738_p0 = scmp.ge.s32.totalorder %s868_s23, 2  ;;  %s652_s25 = sand.u32 1, %s848_s18  }
 0x22a   : > { %s653_s29 = scalar_lea.sflag [#allocation4], %s652_s25 }
 0x22b   : > { %p735_p1 = pnand %p738_p0, %p950_p8 }
 0x22d   : > { %p736_p2 = pneg %p735_p1 }
 0x22f   : > { %843 = dma.done.wait (%p736_p2), %s653_s29, 16  }
 0x230   : > { %845 = vsyncadd (%p736_p2), %s653_s29, 4294967280  ;;  %s18_s23 = sadd.s32 1, %s868_s23   ;;  %s1109_s18 = smov %s852_s19 }
 0x231   : > { %p15_p3 = scmp.ge.s32.totalorder %s18_s23, 4   ;;  %s1110_s19 = smov %s856_s20 }
 0x232   : > { %s1111_s20 = smov %s956_s6  ;;  %s1112_s21 = smov %s864_s22 }
 0x233   : > { %s1113_s22 = smov %s1115_s26  ;;  %17 = sbr.rel (!%p15_p3) target bundleno = 4 (0x4), region = 87 }
 0x238   :  { %657 = vsyncpa [#allocation4], 1 }
 0x239   :  { %659 = vsyncpa [#allocation4 + $0x1], 1 }

</bundles_post_ra>
